<compile_context>
chip_gen: v5e
topology: v5e:2x2
jax: 0.10.0
libtpu: 0.0.40
codegen_flags: <defaults>
</compile_context>

<pallas_src>
import jax
import jax.numpy as jnp
from jax.experimental import pallas as pl
from jax.experimental.pallas import tpu as pltpu

LANES = 128
SUBLANES = 8
GRANULE = SUBLANES * LANES     # 1024 elements: minimal granularity for the (rows, 128) view
MAX_TILE_ROWS = 8192           # 8192 * 128 * 4 B = 4 MiB per input block
ACC_ROWS = 32                  # 4 vregs of independent accumulator chains


def _num_tensorcores():
    """TensorCores per chip for the megacore split; fall back to 1 if unknown."""
    try:
        kind = jax.devices()[0].device_kind.lower()
    except Exception:
        return 1
    return 2 if any(tag in kind for tag in ("v7", "v4", "v5p")) else 1


def knn_entropy_loss_pallas(pred, target, entropies, *,
                            max_tile_rows=MAX_TILE_ROWS, num_cores=None):
    """Scalar float32 = mean(exp(-entropies) * |pred - target|) for any N >= 1."""
    pred = jnp.asarray(pred, jnp.float32).reshape(-1)
    target = jnp.asarray(target, jnp.float32).reshape(-1)
    entropies = jnp.asarray(entropies, jnp.float32).reshape(-1)
    n = pred.shape[0]
    assert n >= 1 and target.shape == (n,) and entropies.shape == (n,)

    # Pad only to the 1024-element granularity needed for the (rows, 128) view.
    # Zero padding contributes exp(-0) * |0 - 0| = 0 and the mean divides by the
    # true N; when N is already aligned there is no copy at all.
    n_padded = -(-n // GRANULE) * GRANULE
    pad = n_padded - n
    if pad:
        pred = jnp.pad(pred, (0, pad))
        target = jnp.pad(target, (0, pad))
        entropies = jnp.pad(entropies, (0, pad))

    rows = n_padded // LANES                        # always a multiple of 8
    tile_rows = min(max_tile_rows, rows)
    acc_rows = ACC_ROWS if tile_rows % ACC_ROWS == 0 else SUBLANES
    num_tiles = -(-rows // tile_rows)               # last tile may be partial

    cores = num_cores if num_cores is not None else _num_tensorcores()
    cores = max(1, min(cores, num_tiles))
    tiles_per_core = -(-num_tiles // cores)

    pred2 = pred.reshape(rows, LANES)
    tgt2 = target.reshape(rows, LANES)
    ent2 = entropies.reshape(rows, LANES)

    if cores * tiles_per_core == num_tiles:
        def in_idx(c, i):
            return (c * tiles_per_core + i, 0)
    else:
        # Clamp any trailing duplicate grid steps onto the last real tile; their
        # contribution is masked to zero inside the kernel, so no OOB DMAs.
        def in_idx(c, i):
            return (jnp.minimum(c * tiles_per_core + i, num_tiles - 1), 0)

    in_spec = pl.BlockSpec((tile_rows, LANES), in_idx)
    out_spec = pl.BlockSpec((1, acc_rows, LANES), lambda c, i: (c, 0, 0))

    def kernel(pred_ref, tgt_ref, ent_ref, out_ref):
        c = pl.program_id(0)
        i = pl.program_id(1)

        # Output block is VMEM-resident across the inner (reduction) axis:
        # standard init-at-first-step accumulator, no scratch needed.
        @pl.when(i == 0)
        def _init():
            out_ref[...] = jnp.zeros_like(out_ref)

        # weight = 1 / exp(entropy) == exp(-entropy); exp rides the EUP slot.
        w = jnp.exp(-ent_ref[...]) * jnp.abs(pred_ref[...] - tgt_ref[...])

        # Zero out (a) rows past the real data in a partial last tile and
        # (b) whole duplicate tiles produced by the clamped per-core split.
        logical_tile = c * tiles_per_core + i
        fetched_tile = jnp.minimum(logical_tile, num_tiles - 1)
        row_ids = fetched_tile * tile_rows + jax.lax.broadcasted_iota(
            jnp.int32, (tile_rows, LANES), 0)
        valid = (row_ids < rows) & (logical_tile < num_tiles)
        w = jnp.where(valid, w, 0.0)

        # Fold the (tile_rows, 128) tile onto acc_rows/8 independent vreg
        # accumulator chains: pure elementwise VPU adds, no XLU in the loop.
        out_ref[...] += jnp.sum(w.reshape(-1, acc_rows, LANES), axis=0)[None]

    partials = pl.pallas_call(
        kernel,
        out_shape=jax.ShapeDtypeStruct((cores, acc_rows, LANES), jnp.float32),
        grid_spec=pltpu.PrefetchScalarGridSpec(
            num_scalar_prefetch=0,
            grid=(cores, tiles_per_core),
            in_specs=[in_spec, in_spec, in_spec],
            out_specs=out_spec,
        ),
        compiler_params=pltpu.CompilerParams(
            dimension_semantics=("parallel", "arbitrary"),
            vmem_limit_bytes=40 * 1024 * 1024,
        ),
    )(pred2, tgt2, ent2)

    # Single tiny cross-lane/sublane reduce outside the kernel; divide by real N.
    return jnp.sum(partials) / jnp.float32(n)


def knn_entropy_loss_ref(pred, target, entropies):
    return jnp.mean(jnp.exp(-entropies) * jnp.abs(pred - target))


if __name__ == "__main__":
    key = jax.random.PRNGKey(0)
    k1, k2, k3 = jax.random.split(key, 3)

    # Aligned-size case (as the module implies: flat vectors of predictions).
    N = 2048
    pred = jax.random.normal(k1, (N,), dtype=jnp.float32)
    target = jax.random.normal(k2, (N,), dtype=jnp.float32)
    entropies = jax.random.uniform(k3, (N,), dtype=jnp.float32, minval=0.0, maxval=3.0)

    loss = jax.block_until_ready(knn_entropy_loss_pallas(pred, target, entropies))
    ref = knn_entropy_loss_ref(pred, target, entropies)
    assert jnp.allclose(loss, ref, rtol=1e-5, atol=1e-6), (loss, ref)

    # Small-shape checks of the ragged-tail / partial-tile / clamped-core paths.
    M = 2500
    p2 = jax.random.normal(k1, (M,), dtype=jnp.float32)
    t2 = jax.random.normal(k2, (M,), dtype=jnp.float32)
    e2 = jax.random.uniform(k3, (M,), dtype=jnp.float32, minval=0.0, maxval=3.0)
    ref2 = knn_entropy_loss_ref(p2, t2, e2)

    # Partial last tile (rows=24 with tile_rows=16) masked in-kernel.
    l_partial = jax.block_until_ready(
        knn_entropy_loss_pallas(p2, t2, e2, max_tile_rows=16, num_cores=1))
    assert jnp.allclose(l_partial, ref2, rtol=1e-5, atol=1e-6), (l_partial, ref2)

    # Clamped duplicate grid step from a forced 2-way core split (3 tiles / 2 cores).
    l_clamp = jax.block_until_ready(
        knn_entropy_loss_pallas(p2, t2, e2, max_tile_rows=8, num_cores=2))
    assert jnp.allclose(l_clamp, ref2, rtol=1e-5, atol=1e-6), (l_clamp, ref2)

    print("KERNEL_OK")
</pallas_src>

<mosaic_0001>
module attributes {stable_mosaic.version = 11 : i64} {
  func.func @kernel(%arg0: i32, %arg1: i32, %arg2: memref<16x128xf32, #tpu.memory_space<vmem>>, %arg3: memref<16x128xf32, #tpu.memory_space<vmem>>, %arg4: memref<16x128xf32, #tpu.memory_space<vmem>>, %arg5: memref<1x8x128xf32, #tpu.memory_space<vmem>>) attributes {dimension_semantics = [#tpu.dimension_semantics<parallel>, #tpu.dimension_semantics<arbitrary>], iteration_bounds = array<i64: 1, 1>, scalar_prefetch = 0 : i64, scratch_operands = 0 : i64, tpu.core_type = #tpu.core_type<tc>, window_params = [{transform_indices = @transform_0, window_bounds = array<i64: 16, 128>}, {transform_indices = @transform_1, window_bounds = array<i64: 16, 128>}, {transform_indices = @transform_2, window_bounds = array<i64: 16, 128>}, {transform_indices = @transform_3, window_bounds = array<i64: 1, 8, 128>}]} {
    %c0_i32 = arith.constant 0 : i32
    %0 = arith.cmpi eq, %arg1, %c0_i32 : i32
    %1 = arith.extui %0 : i1 to i32
    %c0_i32_0 = arith.constant 0 : i32
    %2 = arith.cmpi ne, %1, %c0_i32_0 : i32
    scf.if %2 {
      %cst_17 = arith.constant 0.000000e+00 : f32
      %32 = vector.broadcast %cst_17 : f32 to vector<1x8x128xf32>
      %c0_18 = arith.constant 0 : index
      %c0_19 = arith.constant 0 : index
      %c0_20 = arith.constant 0 : index
      %33 = vector.load %arg5[%c0_18, %c0_19, %c0_20] : memref<1x8x128xf32, #tpu.memory_space<vmem>>, vector<1x8x128xf32>
      tpu.vector_store %arg5[%c0_18, %c0_19, %c0_20], %32 {strides = array<i32>} : memref<1x8x128xf32, #tpu.memory_space<vmem>>, vector<1x8x128xf32>,
    } else {
    }
    %c0 = arith.constant 0 : index
    %c0_1 = arith.constant 0 : index
    %3 = vector.load %arg4[%c0, %c0_1] : memref<16x128xf32, #tpu.memory_space<vmem>>, vector<16x128xf32>
    %cst = arith.constant 0.000000e+00 : f32
    %4 = vector.broadcast %cst : f32 to vector<16x128xf32>
    %5 = arith.subf %4, %3 : vector<16x128xf32>
    %6 = math.exp %5 : vector<16x128xf32>
    %c0_2 = arith.constant 0 : index
    %c0_3 = arith.constant 0 : index
    %7 = vector.load %arg2[%c0_2, %c0_3] : memref<16x128xf32, #tpu.memory_space<vmem>>, vector<16x128xf32>
    %c0_4 = arith.constant 0 : index
    %c0_5 = arith.constant 0 : index
    %8 = vector.load %arg3[%c0_4, %c0_5] : memref<16x128xf32, #tpu.memory_space<vmem>>, vector<16x128xf32>
    %9 = arith.subf %7, %8 : vector<16x128xf32>
    %10 = math.absf %9 : vector<16x128xf32>
    %11 = arith.mulf %6, %10 : vector<16x128xf32>
    %c1_i32 = arith.constant 1 : i32
    %12 = arith.muli %arg0, %c1_i32 : i32
    %13 = arith.addi %12, %arg1 : i32
    %c0_i32_6 = arith.constant 0 : i32
    %14 = arith.minsi %13, %c0_i32_6 : i32
    %c16_i32 = arith.constant 16 : i32
    %15 = arith.muli %14, %c16_i32 : i32
    %16 = tpu.iota {dimensions = array<i32: 0>} : vector<16x128xi32>
    %17 = vector.broadcast %15 : i32 to vector<16x128xi32>
    %18 = arith.addi %17, %16 : vector<16x128xi32>
    %c16_i32_7 = arith.constant 16 : i32
    %19 = vector.broadcast %c16_i32_7 : i32 to vector<16x128xi32>
    %20 = arith.cmpi slt, %18, %19 : vector<16x128xi32>
    %c1_i32_8 = arith.constant 1 : i32
    %21 = arith.cmpi slt, %13, %c1_i32_8 : i32
    %22 = vector.broadcast %21 : i1 to vector<16x128xi1>
    %23 = arith.andi %20, %22 : vector<16x128xi1>
    %cst_9 = arith.constant 0.000000e+00 : f32
    %24 = vector.broadcast %cst_9 : f32 to vector<16x128xf32>
    %25 = arith.select %23, %11, %24 : vector<16x128xi1>, vector<16x128xf32>
    %c0_10 = arith.constant 0 : index
    %c0_11 = arith.constant 0 : index
    %c0_12 = arith.constant 0 : index
    %26 = vector.load %arg5[%c0_10, %c0_11, %c0_12] : memref<1x8x128xf32, #tpu.memory_space<vmem>>, vector<1x8x128xf32>
    %27 = vector.shape_cast %25 : vector<16x128xf32> to vector<2x8x128xf32>
    %cst_13 = arith.constant dense<0.000000e+00> : vector<8x128xf32>
    %28 = vector.multi_reduction <add>, %27, %cst_13 [0] : vector<2x8x128xf32> to vector<8x128xf32>
    %29 = vector.shape_cast %28 : vector<8x128xf32> to vector<1x8x128xf32>
    %30 = arith.addf %26, %29 : vector<1x8x128xf32>
    %c0_14 = arith.constant 0 : index
    %c0_15 = arith.constant 0 : index
    %c0_16 = arith.constant 0 : index
    %31 = vector.load %arg5[%c0_14, %c0_15, %c0_16] : memref<1x8x128xf32, #tpu.memory_space<vmem>>, vector<1x8x128xf32>
    tpu.vector_store %arg5[%c0_14, %c0_15, %c0_16], %30 {strides = array<i32>} : memref<1x8x128xf32, #tpu.memory_space<vmem>>, vector<1x8x128xf32>,
    return
  }
  func.func @transform_0(%arg0: i32, %arg1: i32) -> (i32, i32) {
    %c1_i32 = arith.constant 1 : i32
    %0 = arith.muli %arg0, %c1_i32 : i32
    %1 = arith.addi %0, %arg1 : i32
    %c0_i32 = arith.constant 0 : i32
    %c0_i32_0 = arith.constant 0 : i32
    return %1, %c0_i32 : i32, i32
  }
  func.func @transform_1(%arg0: i32, %arg1: i32) -> (i32, i32) {
    %c1_i32 = arith.constant 1 : i32
    %0 = arith.muli %arg0, %c1_i32 : i32
    %1 = arith.addi %0, %arg1 : i32
    %c0_i32 = arith.constant 0 : i32
    %c0_i32_0 = arith.constant 0 : i32
    return %1, %c0_i32 : i32, i32
  }
  func.func @transform_2(%arg0: i32, %arg1: i32) -> (i32, i32) {
    %c1_i32 = arith.constant 1 : i32
    %0 = arith.muli %arg0, %c1_i32 : i32
    %1 = arith.addi %0, %arg1 : i32
    %c0_i32 = arith.constant 0 : i32
    %c0_i32_0 = arith.constant 0 : i32
    return %1, %c0_i32 : i32, i32
  }
  func.func @transform_3(%arg0: i32, %arg1: i32) -> (i32, i32, i32) {
    %c0_i32 = arith.constant 0 : i32
    %c0_i32_0 = arith.constant 0 : i32
    %c0_i32_1 = arith.constant 0 : i32
    return %arg0, %c0_i32, %c0_i32_0 : i32, i32, i32
  }
}

</mosaic_0001>

<bundles_post_ra>
// kernel: tpu_custom_call.1
= control target key start
LH: loop header
LB: loop body
LE: loop exit
PB: predicated region body
PF: predicated region fallthrough
CT: control target
= control target key end

     0   :  { %8 = vsyncpa [#allocation3], 0  ;;  %s296_s0 = inlined_call_operand.hbm [shape: f32[16,128], index: 0, kind: input, shape index: {}]   ;;  %s297_s1 = inlined_call_operand.hbm [shape: f32[16,128], index: 1, kind: input, shape index: {}]   ;;  %s298_s2 = inlined_call_operand.hbm [shape: f32[16,128], index: 2, kind: input, shape index: {}]   ;;  %s299_s3 = inlined_call_operand.hbm [shape: f32[1,8,128], index: 3, kind: output, shape index: {}]  }
   0x1   :  { %9 = vsyncpa [#allocation6], 0 }
   0x2   :  { %10 = vsyncpa [#allocation4], 0  ;;  %s36_s14 = sshll.u32 %s297_s1, 4  ;;  %s258_s15 = smov [#allocation5]   ;;  %s37_s14 = int_to_ptr.hbm [resolvable:$true] %s36_s14 }
   0x3   :  { %s38_s16 = sshll.u32 %s258_s15, 4  ;;  %s19_s19 = sshll.u32 %s296_s0, 4  ;;  %s39_s16 = int_to_ptr.vmem [resolvable:$true] %s38_s16  ;;  %s20_s19 = int_to_ptr.hbm [resolvable:$true] %s19_s19 }
   0x4   :  { %s259_s20 = smov 128   ;;  %s260_s21 = smov 8  }
   0x5   :  { %44 = dma.hbm_to_vmem [thread:$0]  %s37_s14, 256, %s39_s16, [#allocation6], %s259_s20, %s259_s20, %s260_s21  }
   0x6   :  { %s261_s22 = smov [#allocation2]   ;;  %s53_s26 = sshll.u32 %s298_s2, 4  ;;  %s54_s26 = int_to_ptr.hbm [resolvable:$true] %s53_s26 }
   0x7   :  { %s21_s23 = sshll.u32 %s261_s22, 4  ;;  %s262_s1 = smov [#allocation7]   ;;  %s22_s23 = int_to_ptr.vmem [resolvable:$true] %s21_s23 }
   0x8   :  { %27 = dma.hbm_to_vmem [thread:$0]  %s20_s19, 256, %s22_s23, [#allocation3], %s259_s20, %s259_s20, %s260_s21  }
   0x9   :  { %s55_s27 = sshll.u32 %s262_s1, 4  ;;  %s56_s27 = int_to_ptr.vmem [resolvable:$true] %s55_s27 }
   0xa   :  { %61 = dma.hbm_to_vmem [thread:$0]  %s54_s26, 256, %s56_s27, [#allocation6], %s259_s20, %s259_s20, %s260_s21  }
   0xb   :  { %252 = dma.done.wait [#allocation3], 256  }
   0xc   :  { %253 = vsyncadd [#allocation3], 4294967040 }
   0xd   :  { %254 = dma.done.wait [#allocation6], 512  }
   0xe   :  { %255 = vsyncadd [#allocation6], 4294966784  ;;  %v85_v0 = vld [vmem:[#allocation7] sm:$0xff]  ;;  %v86_v1 = vld [vmem:[#allocation7 + $0x8] sm:$0xff]  ;;  %s263_s0 = smov [#allocation8]   ;;  %s134_s30 = sshll.u32 %s299_s3, 4  ;;  %s135_s30 = int_to_ptr.hbm [resolvable:$true] %s134_s30 }
   0xf   :  { %v87_v2 = vsub.f32 0.0, %v85_v0  ;;  %v88_v3 = vsub.f32 0.0, %v86_v1  ;;  %v93_v4 = vld [vmem:[#allocation2] sm:$0xff]  ;;  %v95_v5 = vld [vmem:[#allocation5] sm:$0xff]  ;;  %v94_v6 = vld [vmem:[#allocation2 + $0x8] sm:$0xff]  ;;  %s132_s2 = sshll.u32 %s263_s0, 4  ;;  %s133_s2 = int_to_ptr.vmem [resolvable:$true] %s132_s2 }
  0x10   :  { %v96_v7 = vld [vmem:[#allocation5 + $0x8] sm:$0xff]  ;;  %v97_v10 = vsub.f32 %v93_v4, %v95_v5 }
  0x11   :  { %v89_v8 = vmul.f32 1.442695, %v87_v2  ;;  %v91_v9 = vmul.f32 1.442695, %v88_v3  ;;  %v98_v11 = vsub.f32 %v94_v6, %v96_v7 }
  0x12   :  { %v99_v12 = vand.u32 2147483647, %v97_v10 }
  0x13   :  { %152 = vpow2.f32 %v89_v8  ;;  %v100_v13 = vand.u32 2147483647, %v98_v11 }
  0x14   :  { %154 = vpow2.f32 %v91_v9 }
  0x19   :  { %v153_v14 = vpop.eup %152 }
  0x1a   :  { %v155_v15 = vpop.eup %154  ;;  %v101_v16 = vmul.f32 %v153_v14, %v99_v12 }
  0x1b   :  { %v102_v17 = vmul.f32 %v155_v15, %v100_v13 }
  0x1d   :  { %v124_v18 = vadd.f32 %v102_v17, %v101_v16 }
  0x1f   :  { %126 = vst [vmem:[#allocation8] sm:$0xff] %v124_v18 }
  0x20   :  { %137 = dma.vmem_to_hbm [thread:$0]  %s133_s2, 128, %s135_s30, [#allocation4]  }
  0x21   :  { %256 = dma.done.wait [#allocation4], 128  }
  0x22   :  { %257 = vsyncadd [#allocation4], 4294967168 }
  0x23   :  { %142 = vsyncpa [#allocation3], 1 }
  0x24   :  { %143 = vsyncpa [#allocation6], 1 }
  0x25   :  { %144 = vsyncpa [#allocation4], 1 }

</bundles_post_ra>
